<compile_context>
chip_gen: v7x
topology: tpu7x:2x2x1
jax: 0.10.0
libtpu: 0.0.40
codegen_flags: <defaults>
</compile_context>

<pallas_src>
import functools

import jax
import jax.numpy as jnp
from jax.experimental import pallas as pl
from jax.experimental.pallas import tpu as pltpu


def _complex_conv1x1_kernel(x_ref, w_ref, b_ref, o_ref):
    """One (batch, pixel-tile) step of the fused complex 1x1 conv.

    x_ref : (2*C_in,  T)  [x_re ; x_im] channel-stacked pixels (lane-dense)
    w_ref : (2*C_out, 2*C_in)  block weight [[wr, -wi], [wi, wr]]
    b_ref : (2*C_out, 1)       fused bias   [br - bi ; br + bi]
    o_ref : (2*C_out, T)       [out_re ; out_im]
    """
    acc = jnp.dot(w_ref[...], x_ref[...], preferred_element_type=jnp.float32)
    o_ref[...] = (acc + b_ref[...]).astype(o_ref.dtype)


def _round_up(v, m):
    return ((v + m - 1) // m) * m


@functools.partial(jax.jit, static_argnames=("tile_hw",))
def out_conv(x, w_re, w_im, b_re, b_im, *, tile_hw=32768):
    """Complex 1x1 conv.

    x    : (B, 2, C_in, H, W)  float32 (bf16 also works; f32 MXU accumulate)
    w_re : (C_out, C_in, 1, 1) float32   (nn.Conv2d weight layout)
    w_im : (C_out, C_in, 1, 1) float32
    b_re : (C_out,)            float32
    b_im : (C_out,)            float32
    returns (B, 2, C_out, H, W)
    """
    B, two, Cin, H, W = x.shape
    assert two == 2
    Cout = w_re.shape[0]
    HW = H * W

    # ---- Tile selection: as big as the VMEM working budget allows. ---------
    # Per step: double-buffered input tile (2*Cin, t) + double-buffered output
    # tile (2*Cout, t).  24 MiB working budget is safe on every generation
    # (v5e 16 MiB scoped default is raised below via vmem_limit_bytes; v7x has
    # 64 MiB physical per TC).
    itemsize = jnp.dtype(x.dtype).itemsize
    vmem_working_budget = 24 * 1024 * 1024
    per_px_bytes = 2 * (2 * Cin + 2 * Cout) * itemsize      # double-buffered
    t_budget = max(128, (vmem_working_budget // per_px_bytes) // 128 * 128)

    hw_128 = _round_up(HW, 128)
    t = min(tile_hw, hw_128, t_budget)
    t = max(128, (t // 128) * 128)                           # multiple of 128
    if B == 1:
        # Keep >= 2 spatial grid steps so v7x's second TensorCore has work.
        half = _round_up(pl.cdiv(HW, 2), 128)
        t = max(128, min(t, half))
    nt = pl.cdiv(HW, t)

    # Scoped-VMEM limit: actual need (tiles + resident weights/bias) with 2x
    # headroom, clamped to [16 MiB, 48 MiB] (>= v5e default, < v7x physical).
    vmem_need = (2 * (2 * Cin + 2 * Cout) * t * itemsize
                 + (2 * Cout) * (2 * Cin + 1) * 4)
    vmem_limit = int(min(max(2 * vmem_need, 16 * 1024 * 1024),
                         48 * 1024 * 1024))

    # Free reshape: complex axis is adjacent to the channel axis, so real/imag
    # stack straight into a (2*Cin) channel axis — no transpose, no HBM pass,
    # and NO padding/slicing: the ragged tail block is clipped by Pallas.
    x2 = x.reshape(B, 2 * Cin, HW)

    # Fused block weight / bias (computed once, resident in VMEM).
    wr = w_re.reshape(Cout, Cin)
    wi = w_im.reshape(Cout, Cin)
    w_big = jnp.concatenate(
        [jnp.concatenate([wr, -wi], axis=1),
         jnp.concatenate([wi, wr], axis=1)], axis=0)          # (2*Cout, 2*Cin)
    b_big = jnp.concatenate([b_re - b_im, b_re + b_im]).reshape(2 * Cout, 1)

    out = pl.pallas_call(
        _complex_conv1x1_kernel,
        out_shape=jax.ShapeDtypeStruct((B, 2 * Cout, HW), x.dtype),
        grid=(B, nt),
        in_specs=[
            # (batch squeezed, full channel axis, pixel tile) — lane-dense.
            pl.BlockSpec((None, 2 * Cin, t), lambda b, i: (b, 0, i)),
            pl.BlockSpec((2 * Cout, 2 * Cin), lambda b, i: (0, 0)),  # resident
            pl.BlockSpec((2 * Cout, 1), lambda b, i: (0, 0)),        # resident
        ],
        out_specs=pl.BlockSpec((None, 2 * Cout, t), lambda b, i: (b, 0, i)),
        compiler_params=pltpu.CompilerParams(
            dimension_semantics=("parallel", "parallel"),
            vmem_limit_bytes=vmem_limit),
    )(x2, w_big, b_big)

    # Free metadata reshape: (B, 2*Cout, HW) -> (B, 2, Cout, H, W).
    return out.reshape(B, 2, Cout, H, W)


def _reference(x, w_re, w_im, b_re, b_im):
    """Pure-JAX reference matching the PyTorch ComplexConv2d semantics."""
    B, _, Cin, H, W = x.shape
    Cout = w_re.shape[0]
    wr = w_re.reshape(Cout, Cin)
    wi = w_im.reshape(Cout, Cin)

    def conv1x1(inp, w, b):  # inp: (B, Cin, H, W)
        y = jnp.einsum("bchw,oc->bohw", inp, w)
        return y + b[None, :, None, None]

    x_re, x_im = x[:, 0], x[:, 1]
    out_re = conv1x1(x_re, wr, b_re) - conv1x1(x_im, wi, b_im)
    out_im = conv1x1(x_im, wr, b_re) + conv1x1(x_re, wi, b_im)
    return jnp.stack([out_re, out_im], axis=1)


if __name__ == "__main__":
    B, Cin, Cout = 2, 4, 3
    key = jax.random.PRNGKey(0)
    kx, kwr, kwi, kbr, kbi, kx2 = jax.random.split(key, 6)

    # Deterministic parameter init (synthetic, not a checkpoint load).
    w_re = jax.random.normal(kwr, (Cout, Cin, 1, 1), dtype=jnp.float32) * 0.1
    w_im = jax.random.normal(kwi, (Cout, Cin, 1, 1), dtype=jnp.float32) * 0.1
    b_re = jax.random.normal(kbr, (Cout,), dtype=jnp.float32) * 0.1
    b_im = jax.random.normal(kbi, (Cout,), dtype=jnp.float32) * 0.1

    # --- Case 1: HW a multiple of 128 ---------------------------------------
    H, W = 16, 16
    x = jax.random.normal(kx, (B, 2, Cin, H, W), dtype=jnp.float32)
    out = jax.block_until_ready(out_conv(x, w_re, w_im, b_re, b_im))
    ref = _reference(x, w_re, w_im, b_re, b_im)
    assert out.shape == (B, 2, Cout, H, W)
    assert jnp.allclose(out, ref, atol=1e-5, rtol=1e-5), "mismatch vs reference"

    # --- Case 2: HW NOT a multiple of 128 (exercises ragged-tail masking) ---
    H2, W2 = 10, 10
    x2 = jax.random.normal(kx2, (B, 2, Cin, H2, W2), dtype=jnp.float32)
    out2 = jax.block_until_ready(out_conv(x2, w_re, w_im, b_re, b_im))
    ref2 = _reference(x2, w_re, w_im, b_re, b_im)
    assert out2.shape == (B, 2, Cout, H2, W2)
    assert jnp.allclose(out2, ref2, atol=1e-5, rtol=1e-5), "ragged-tail mismatch"

    print("KERNEL_OK")
</pallas_src>

<mosaic_0001>
module attributes {stable_mosaic.version = 11 : i64} {
  func.func @_complex_conv1x1_kernel(%arg0: i32, %arg1: i32, %arg2: memref<1x8x256xf32, #tpu.memory_space<vmem>>, %arg3: memref<6x8xf32, #tpu.memory_space<vmem>>, %arg4: memref<6x1xf32, #tpu.memory_space<vmem>>, %arg5: memref<1x6x256xf32, #tpu.memory_space<vmem>>) attributes {dimension_semantics = [#tpu.dimension_semantics<parallel>, #tpu.dimension_semantics<parallel>], iteration_bounds = array<i64: 2, 1>, scalar_prefetch = 0 : i64, scratch_operands = 0 : i64, tpu.core_type = #tpu.core_type<tc>, window_params = [{transform_indices = @transform_0, window_bounds = array<i64: 1, 8, 256>}, {pipeline_mode = #tpu.pipeline_mode<synchronous>, transform_indices = @transform_1, window_bounds = array<i64: 6, 8>}, {pipeline_mode = #tpu.pipeline_mode<synchronous>, transform_indices = @transform_2, window_bounds = array<i64: 6, 1>}, {transform_indices = @transform_3, window_bounds = array<i64: 1, 6, 256>}]} {
    %c0 = arith.constant 0 : index
    %c0_0 = arith.constant 0 : index
    %0 = vector.load %arg3[%c0, %c0_0] : memref<6x8xf32, #tpu.memory_space<vmem>>, vector<6x8xf32>
    %c0_1 = arith.constant 0 : index
    %c0_2 = arith.constant 0 : index
    %c0_3 = arith.constant 0 : index
    %1 = vector.load %arg2[%c0_1, %c0_2, %c0_3] : memref<1x8x256xf32, #tpu.memory_space<vmem>>, vector<1x8x256xf32>
    %2 = vector.shape_cast %1 : vector<1x8x256xf32> to vector<8x256xf32>
    %cst = arith.constant dense<0.000000e+00> : vector<6x256xf32>
    %3 = tpu.matmul %0, %2, %cst {dimension_numbers = #tpu.dot_dimension_numbers<[1], [0], [0], [1], [0, 0, 1, 1], [], []>} : vector<6x8xf32>, vector<8x256xf32>, vector<6x256xf32> -> vector<6x256xf32>
    %c0_4 = arith.constant 0 : index
    %c0_5 = arith.constant 0 : index
    %4 = vector.load %arg4[%c0_4, %c0_5] : memref<6x1xf32, #tpu.memory_space<vmem>>, vector<6x1xf32>
    %5 = vector.broadcast %4 : vector<6x1xf32> to vector<6x256xf32>
    %6 = arith.addf %3, %5 : vector<6x256xf32>
    %c0_6 = arith.constant 0 : index
    %c0_7 = arith.constant 0 : index
    %c0_8 = arith.constant 0 : index
    %7 = vector.load %arg5[%c0_6, %c0_7, %c0_8] : memref<1x6x256xf32, #tpu.memory_space<vmem>>, vector<1x6x256xf32>
    %8 = vector.shape_cast %7 : vector<1x6x256xf32> to vector<6x256xf32>
    %9 = vector.shape_cast %6 : vector<6x256xf32> to vector<1x6x256xf32>
    tpu.vector_store %arg5[%c0_6, %c0_7, %c0_8], %9 {strides = array<i32>} : memref<1x6x256xf32, #tpu.memory_space<vmem>>, vector<1x6x256xf32>,
    return
  }
  func.func @transform_0(%arg0: i32, %arg1: i32) -> (i32, i32, i32) {
    %c0_i32 = arith.constant 0 : i32
    %c0_i32_0 = arith.constant 0 : i32
    return %arg0, %c0_i32, %arg1 : i32, i32, i32
  }
  func.func @transform_1(%arg0: i32, %arg1: i32) -> (i32, i32) {
    %c0_i32 = arith.constant 0 : i32
    %c0_i32_0 = arith.constant 0 : i32
    %c0_i32_1 = arith.constant 0 : i32
    return %c0_i32, %c0_i32_0 : i32, i32
  }
  func.func @transform_2(%arg0: i32, %arg1: i32) -> (i32, i32) {
    %c0_i32 = arith.constant 0 : i32
    %c0_i32_0 = arith.constant 0 : i32
    %c0_i32_1 = arith.constant 0 : i32
    return %c0_i32, %c0_i32_0 : i32, i32
  }
  func.func @transform_3(%arg0: i32, %arg1: i32) -> (i32, i32, i32) {
    %c0_i32 = arith.constant 0 : i32
    %c0_i32_0 = arith.constant 0 : i32
    return %arg0, %c0_i32, %arg1 : i32, i32, i32
  }
}

</mosaic_0001>

<bundles_post_ra>
// kernel: out_conv.1
= control target key start
LH: loop header
LB: loop body
LE: loop exit
PB: predicated region body
PF: predicated region fallthrough
CT: control target
= control target key end

     0   :  { %s470_s12 = smov 0   ;;  %s472_s13 = smov 0   ;;  %s509_s0 = inlined_call_operand.vmem [shape: f32[2,8,256], index: 0, kind: input, shape index: {}]   ;;  %s510_s1 = inlined_call_operand.vmem [shape: f32[6,8], index: 1, kind: input, shape index: {}]   ;;  %s511_s2 = inlined_call_operand.vmem [shape: f32[6,1], index: 2, kind: input, shape index: {}]   ;;  %s512_s3 = inlined_call_operand.vmem [shape: f32[2,6,256], index: 3, kind: output, shape index: {}]  }
   0x1   :  { %s474_s14 = smov 0  }
   0x2 LB: > { %s25_s15 = sadd.s32 1, %s442_s13  ;;  %p387_p0 = scmp.ge.s32.totalorder %s446_s14, 1  ;;  %s446_s14 = sphi %s474_s14, %s13_s14   ;;  %s442_s13 = sphi %s472_s13, %s514_s13   ;;  %s438_s12 = sphi %s470_s12, %s513_s12  }
   0x3   : > { %p27_p1 = scmp.ge.s32.totalorder %s25_s15, 2  ;;  %p158_p2 = scmp.lt.s32.totalorder %s446_s14, 3 }
   0x5   : > { %s516_s15 = smov (%p27_p1, %s25_s15), 0  ;;  %p159_p3 = pnand %p387_p0, %p158_p2 }
   0x6   : > { %p191_p4 = scmp.lt.s32.totalorder (!%p159_p3), %s438_s12, 1  ;;  %v448_v0 = vmov (!%p159_p3), 0.0   ;;  %v449_v1 = vmov (!%p159_p3), 0   ;;  %v213_v2 = vld [vmem:[%s511_s2] sm:$0x3f] (!%p159_p3)  ;;  %vm219_vm0 = vcmask (!%p159_p3), 64512  }
   0x7   : > { %162 = sbr.rel (%p159_p3) target bundleno = 236 (0xec), region = 32  ;;  %287 = vmatprep.mubr.f32.mxu0 (!%p159_p3), %v448_v0  ;;  %423 = vset.pattern.permute.xlu0 (!%p159_p3), %v449_v1  ;;  %v210_v5 = vld [vmem:[%s510_s1] sm:$0x3f] (!%p159_p3) }
   0x8   : > { %216 = vperm.xlu0 (!%p159_p3), %423, %v213_v2  }
   0xe   : > { %s518_s12 = smov (!%p191_p4, %s438_s12), 1 }
   0xf   : > { %s395_s18 = sshll.u32 %s518_s12, 4 }
  0x10   : > { %s198_s21 = scalar_lea.vmem %s509_s0, %s395_s18  ;;  %s208_s26 = scalar_lea.vmem %s512_s3, %s395_s18 }
  0x11   : > { %v212_v3 = vld [vmem:[%s198_s21 + $0x8] sm:$0xff]  ;;  %v211_v4 = vld [vmem:[%s198_s21] sm:$0xff] }
  0x12   : > { %223 = vmatprep.subr.mxu0 %v212_v3 }
  0x13   : > { %224 = vmatpush1.msra.mxu0 %v211_v4 }
  0x14   : > { %392 = vmatmul.mubr.msk.f32.vlgmr.msra.gmra.mrb[0].mxu0 %vm219_vm0, %v210_v5 }
  0x87   : > { %v217_v6 = vpop.permute.xlu0 %216 }
  0xe7   : > { %v289_v7 = vpop.f32.mrb[0].mxu0 }
  0xe8   : > { %v290_v8 = vadd.f32 %v289_v7, %v217_v6  ;;  %v291_v9 = vpop.f32.mrb[1].mxu0 }
  0xe9   : > { %v292_v10 = vadd.f32 %v291_v9, %v217_v6 }
  0xea   : > { %294 = vst [vmem:[%s208_s26] sm:$0x3f] %v290_v8 }
  0xeb   : > { %295 = vst [vmem:[%s208_s26 + $0x8] sm:$0x3f] %v292_v10 }
  0xec PF: > { %s13_s14 = sadd.s32 1, %s446_s14   ;;  %s513_s12 = smov %s442_s13 }
  0xed   : > { %p10_p5 = scmp.ge.s32.totalorder %s13_s14, 4   ;;  %s514_s13 = smov %s516_s15 }
  0xef   :  { %12 = sbr.rel (!%p10_p5) target bundleno = 2 (0x2), region = 62 }

</bundles_post_ra>
